<compile_context>
chip_gen: v7x
topology: tpu7x:2x2x1
jax: 0.10.0
libtpu: 0.0.40
codegen_flags: <defaults>
</compile_context>

<pallas_src>
import functools

import jax
import jax.numpy as jnp
from jax.experimental import pallas as pl
from jax.experimental.pallas import tpu as pltpu


# -----------------------------------------------------------------------------
# Pallas kernel: full ClsHead for ONE batch element per grid step.
# -----------------------------------------------------------------------------
def cls_head_kernel(h_ref,      # (P, E)    bf16  hidden states of batch b (leading dim squeezed)
                    w1_ref,     # (P//2, P) bf16  reductor.0 weight (resident)
                    b1_ref,     # (P//2, 1) f32   reductor.0 bias (column)
                    w2_ref,     # (P//2, 1) f32   reductor.2 weight (column -> VPU/XLU path)
                    b2_ref,     # (1, 1)    f32   reductor.2 bias  [SMEM scalar]
                    gamma_ref,  # (1, E)    f32   layernorm weight
                    beta_ref,   # (1, E)    f32   layernorm bias
                    w3t_ref,    # (E, E//2) bf16  mlp_head.0 weight, pre-transposed
                    b3_ref,     # (1, E//2) f32   mlp_head.0 bias
                    w4t_ref,    # (E//2, C) bf16  mlp_head.2 weight, pre-transposed
                    b4_ref,     # (1, C)    f32   mlp_head.2 bias
                    out_ref):   # (1, C)    f32   logits of batch b
    # ---- reductor.0: Linear(P, P//2) over the patch axis (dominant MXU work),
    #      embedding channels packed along lanes.  bf16 in, f32 accumulate.
    z = jnp.dot(w1_ref[...], h_ref[...],
                preferred_element_type=jnp.float32)            # (P//2, E) f32
    z = jnp.maximum(z + b1_ref[...], 0.0)                      # bias + ReLU (VPU)

    # ---- reductor.2: Linear(P//2, 1) as a VPU multiply + sublane reduce
    #      (keeps the M=1 matmul off the MXU).
    v = jnp.sum(z * w2_ref[...], axis=0, keepdims=True)        # (1, E) f32
    v = v + b2_ref[0, 0]                                       # scalar from SMEM

    # ---- LayerNorm over the embedding dim (eps=1e-6, biased variance), f32.
    mean = jnp.mean(v, axis=-1, keepdims=True)
    cent = v - mean
    var = jnp.mean(cent * cent, axis=-1, keepdims=True)
    y = cent * jax.lax.rsqrt(var + 1e-6)
    y = y * gamma_ref[...] + beta_ref[...]                      # (1, E)

    # ---- dropout: inference mode -> identity.
    # TODO(synk): training-mode dropout would need pltpu.prng_seed/prng_random_bits.

    # ---- mlp_head: Linear(E, E//2) -> ReLU -> Linear(E//2, C).
    h1 = jnp.dot(y.astype(jnp.bfloat16), w3t_ref[...],
                 preferred_element_type=jnp.float32)            # (1, E//2)
    h1 = jnp.maximum(h1 + b3_ref[...], 0.0)
    logits = jnp.dot(h1.astype(jnp.bfloat16), w4t_ref[...],
                     preferred_element_type=jnp.float32)        # (1, C)
    out_ref[...] = (logits + b4_ref[...]).astype(out_ref.dtype)


# -----------------------------------------------------------------------------
# Wrapper: batch grid over the untransposed hidden states.
# -----------------------------------------------------------------------------
def cls_head_pallas(hidden, params):
    """hidden: (B, P, E) f32 encoder output -> logits (B, C) f32."""
    B, P, E = hidden.shape
    P2, E2 = P // 2, E // 2
    C = params["w4t"].shape[1]

    # bf16 MXU operand; XLA fuses this cast into the encoder-projection epilogue.
    hb = hidden.astype(jnp.bfloat16)

    flops = B * (2 * P2 * P * E                # reductor.0 matmul (dominant)
                 + 3 * P2 * E                  # bias + ReLU + w2-weighted reduce
                 + 2 * E * E2 + 2 * E2 * C)    # mlp head
    bytes_accessed = (B * P * E * 2            # hidden (bf16)
                      + P2 * P * 2 + E * E2 * 2 + E2 * C * 2        # bf16 weights
                      + (P2 * 2 + 2 * E + E2 + C + 1) * 4           # f32 small tensors
                      + B * C * 4)                                  # logits out

    logits3 = pl.pallas_call(
        cls_head_kernel,
        out_shape=jax.ShapeDtypeStruct((B, 1, C), jnp.float32),
        grid=(B,),
        in_specs=[
            pl.BlockSpec((None, P, E), lambda b: (b, 0, 0)),        # hidden[b]
            pl.BlockSpec((P2, P), lambda b: (0, 0)),                # w1 (resident)
            pl.BlockSpec((P2, 1), lambda b: (0, 0)),                # b1
            pl.BlockSpec((P2, 1), lambda b: (0, 0)),                # w2 column
            pl.BlockSpec((1, 1), lambda b: (0, 0),
                         memory_space=pltpu.MemorySpace.SMEM),      # b2 scalar
            pl.BlockSpec((1, E), lambda b: (0, 0)),                 # gamma
            pl.BlockSpec((1, E), lambda b: (0, 0)),                 # beta
            pl.BlockSpec((E, E2), lambda b: (0, 0)),                # w3t
            pl.BlockSpec((1, E2), lambda b: (0, 0)),                # b3
            pl.BlockSpec((E2, C), lambda b: (0, 0)),                # w4t
            pl.BlockSpec((1, C), lambda b: (0, 0)),                 # b4
        ],
        out_specs=pl.BlockSpec((None, 1, C), lambda b: (b, 0, 0)),
        compiler_params=pltpu.CompilerParams(
            dimension_semantics=("parallel",),          # megacore on v7x
            vmem_limit_bytes=48 * 1024 * 1024),         # fits v7x 64 MiB, raises v5e/v6e default
        cost_estimate=pl.CostEstimate(flops=flops, transcendentals=B,
                                      bytes_accessed=bytes_accessed),
    )(hb, params["w1"], params["b1"], params["w2"], params["b2"],
      params["gamma"], params["beta"], params["w3t"], params["b3"],
      params["w4t"], params["b4"])
    return logits3.reshape(B, C)


# -----------------------------------------------------------------------------
# Stand-in visual encoder (plain-JAX glue) + parameter init.
# -----------------------------------------------------------------------------
def patchify_encoder(x, proj_w, proj_b, patch=4):
    """x: (B, C, H, W) NCHW -> last_hidden_state (B, P, E)."""
    B, C, H, W = x.shape
    gh, gw = H // patch, W // patch
    x = x.reshape(B, C, gh, patch, gw, patch)
    x = jnp.transpose(x, (0, 2, 4, 1, 3, 5))                # (B, gh, gw, C, p, p)
    x = x.reshape(B, gh * gw, C * patch * patch)            # (B, P, C*p*p)
    return jnp.dot(x, proj_w) + proj_b                      # (B, P, E)


def init_params(key, num_patches, embed_dim, num_classes, patch_in_dim):
    ks = jax.random.split(key, 10)
    s = 0.05
    p2, e2 = num_patches // 2, embed_dim // 2
    return {
        # ClsHead.reductor (matmul weights stored bf16 for the MXU; biases f32)
        "w1": (s * jax.random.normal(ks[0], (p2, num_patches), jnp.float32)
               ).astype(jnp.bfloat16),
        "b1": s * jax.random.normal(ks[1], (p2, 1), jnp.float32),
        "w2": s * jax.random.normal(ks[2], (p2, 1), jnp.float32),   # column -> VPU path
        "b2": s * jax.random.normal(ks[3], (1, 1), jnp.float32),
        # ClsHead.layernorm
        "gamma": jnp.ones((1, embed_dim), jnp.float32),
        "beta": jnp.zeros((1, embed_dim), jnp.float32),
        # ClsHead.mlp_head (pre-transposed, bf16)
        "w3t": (s * jax.random.normal(ks[4], (embed_dim, e2), jnp.float32)
                ).astype(jnp.bfloat16),
        "b3": s * jax.random.normal(ks[5], (1, e2), jnp.float32),
        "w4t": (s * jax.random.normal(ks[6], (e2, num_classes), jnp.float32)
                ).astype(jnp.bfloat16),
        "b4": s * jax.random.normal(ks[7], (1, num_classes), jnp.float32),
        # stand-in encoder projection (plain-JAX glue)
        "enc_w": s * jax.random.normal(ks[8], (patch_in_dim, embed_dim), jnp.float32),
        "enc_b": s * jax.random.normal(ks[9], (embed_dim,), jnp.float32),
    }


def cls_head_reference(hidden, p):
    """Pure-jnp reference mirroring ClsHead (eval mode) with the same bf16 casts."""
    hb = hidden.astype(jnp.bfloat16).astype(jnp.float32)                   # (B, P, E)
    w1 = p["w1"].astype(jnp.float32)
    z = jnp.maximum(jnp.einsum("jp,bpe->bje", w1, hb) + p["b1"][None], 0.0)
    v = jnp.sum(z * p["w2"][None], axis=1) + p["b2"][0, 0]                 # (B, E)
    mean = jnp.mean(v, axis=-1, keepdims=True)
    var = jnp.mean((v - mean) ** 2, axis=-1, keepdims=True)
    y = (v - mean) * jax.lax.rsqrt(var + 1e-6) * p["gamma"][0] + p["beta"][0]
    yb = y.astype(jnp.bfloat16).astype(jnp.float32)
    h1 = jnp.maximum(yb @ p["w3t"].astype(jnp.float32) + p["b3"][0], 0.0)
    h1b = h1.astype(jnp.bfloat16).astype(jnp.float32)
    return h1b @ p["w4t"].astype(jnp.float32) + p["b4"][0]


@functools.partial(jax.jit, static_argnames=("patch",))
def cls_model_forward(x, params, patch=4):
    hidden = patchify_encoder(x, params["enc_w"], params["enc_b"], patch=patch)
    return cls_head_pallas(hidden, params), hidden


if __name__ == "__main__":
    # Small shapes consistent with the module structure.
    B, C, H, W = 2, 4, 16, 16
    PATCH = 4
    NUM_PATCHES = (H // PATCH) * (W // PATCH)   # 16
    EMBED_DIM = 32
    NUM_CLASSES = 8

    key = jax.random.PRNGKey(0)
    kx, kp = jax.random.split(key)
    x = jax.random.normal(kx, (B, C, H, W), jnp.float32)
    params = init_params(kp, NUM_PATCHES, EMBED_DIM, NUM_CLASSES,
                         patch_in_dim=C * PATCH * PATCH)

    logits, hidden = cls_model_forward(x, params, patch=PATCH)
    logits = jax.block_until_ready(logits)

    ref = cls_head_reference(hidden, params)
    assert logits.shape == (B, NUM_CLASSES)
    assert jnp.allclose(logits, ref, atol=2e-3, rtol=2e-3), "mismatch vs reference"

    print("KERNEL_OK")
</pallas_src>

<mosaic_0001>
module attributes {stable_mosaic.version = 11 : i64} {
  func.func @cls_head_kernel(%arg0: i32, %arg1: memref<1x16x32xbf16, #tpu.memory_space<vmem>>, %arg2: memref<8x16xbf16, #tpu.memory_space<vmem>>, %arg3: memref<8x1xf32, #tpu.memory_space<vmem>>, %arg4: memref<8x1xf32, #tpu.memory_space<vmem>>, %arg5: memref<1x1xf32, #tpu.memory_space<smem>>, %arg6: memref<1x32xf32, #tpu.memory_space<vmem>>, %arg7: memref<1x32xf32, #tpu.memory_space<vmem>>, %arg8: memref<32x16xbf16, #tpu.memory_space<vmem>>, %arg9: memref<1x16xf32, #tpu.memory_space<vmem>>, %arg10: memref<16x8xbf16, #tpu.memory_space<vmem>>, %arg11: memref<1x8xf32, #tpu.memory_space<vmem>>, %arg12: memref<1x1x8xf32, #tpu.memory_space<vmem>>) attributes {dimension_semantics = [#tpu.dimension_semantics<parallel>], iteration_bounds = array<i64: 2>, scalar_prefetch = 0 : i64, scratch_operands = 0 : i64, tpu.core_type = #tpu.core_type<tc>, window_params = [{transform_indices = @transform_0, window_bounds = array<i64: 1, 16, 32>}, {pipeline_mode = #tpu.pipeline_mode<synchronous>, transform_indices = @transform_1, window_bounds = array<i64: 8, 16>}, {pipeline_mode = #tpu.pipeline_mode<synchronous>, transform_indices = @transform_2, window_bounds = array<i64: 8, 1>}, {pipeline_mode = #tpu.pipeline_mode<synchronous>, transform_indices = @transform_3, window_bounds = array<i64: 8, 1>}, {transform_indices = @transform_4, window_bounds = array<i64: 1, 1>}, {pipeline_mode = #tpu.pipeline_mode<synchronous>, transform_indices = @transform_5, window_bounds = array<i64: 1, 32>}, {pipeline_mode = #tpu.pipeline_mode<synchronous>, transform_indices = @transform_6, window_bounds = array<i64: 1, 32>}, {pipeline_mode = #tpu.pipeline_mode<synchronous>, transform_indices = @transform_7, window_bounds = array<i64: 32, 16>}, {pipeline_mode = #tpu.pipeline_mode<synchronous>, transform_indices = @transform_8, window_bounds = array<i64: 1, 16>}, {pipeline_mode = #tpu.pipeline_mode<synchronous>, transform_indices = @transform_9, window_bounds = array<i64: 16, 8>}, {pipeline_mode = #tpu.pipeline_mode<synchronous>, transform_indices = @transform_10, window_bounds = array<i64: 1, 8>}, {transform_indices = @transform_11, window_bounds = array<i64: 1, 1, 8>}]} {
    %c0 = arith.constant 0 : index
    %c0_0 = arith.constant 0 : index
    %0 = vector.load %arg2[%c0, %c0_0] : memref<8x16xbf16, #tpu.memory_space<vmem>>, vector<8x16xbf16>
    %c0_1 = arith.constant 0 : index
    %c0_2 = arith.constant 0 : index
    %c0_3 = arith.constant 0 : index
    %1 = vector.load %arg1[%c0_1, %c0_2, %c0_3] : memref<1x16x32xbf16, #tpu.memory_space<vmem>>, vector<1x16x32xbf16>
    %2 = vector.shape_cast %1 : vector<1x16x32xbf16> to vector<16x32xbf16>
    %cst = arith.constant dense<0.000000e+00> : vector<8x32xf32>
    %3 = tpu.matmul %0, %2, %cst {dimension_numbers = #tpu.dot_dimension_numbers<[1], [0], [0], [1], [0, 0, 1, 1], [], []>} : vector<8x16xbf16>, vector<16x32xbf16>, vector<8x32xf32> -> vector<8x32xf32>
    %c0_4 = arith.constant 0 : index
    %c0_5 = arith.constant 0 : index
    %4 = vector.load %arg3[%c0_4, %c0_5] : memref<8x1xf32, #tpu.memory_space<vmem>>, vector<8x1xf32>
    %5 = vector.broadcast %4 : vector<8x1xf32> to vector<8x32xf32>
    %6 = arith.addf %3, %5 : vector<8x32xf32>
    %cst_6 = arith.constant 0.000000e+00 : f32
    %7 = vector.broadcast %cst_6 : f32 to vector<8x32xf32>
    %8 = arith.maximumf %6, %7 : vector<8x32xf32>
    %c0_7 = arith.constant 0 : index
    %c0_8 = arith.constant 0 : index
    %9 = vector.load %arg4[%c0_7, %c0_8] : memref<8x1xf32, #tpu.memory_space<vmem>>, vector<8x1xf32>
    %10 = vector.broadcast %9 : vector<8x1xf32> to vector<8x32xf32>
    %11 = arith.mulf %8, %10 : vector<8x32xf32>
    %cst_9 = arith.constant dense<0.000000e+00> : vector<32xf32>
    %12 = vector.multi_reduction <add>, %11, %cst_9 [0] : vector<8x32xf32> to vector<32xf32>
    %13 = vector.shape_cast %12 : vector<32xf32> to vector<1x32xf32>
    %c0_10 = arith.constant 0 : index
    %c0_11 = arith.constant 0 : index
    %14 = memref.load %arg5[%c0_10, %c0_11] : memref<1x1xf32, #tpu.memory_space<smem>>
    %15 = vector.broadcast %14 : f32 to vector<1x32xf32>
    %16 = arith.addf %13, %15 : vector<1x32xf32>
    %cst_12 = arith.constant dense<0.000000e+00> : vector<1xf32>
    %17 = vector.multi_reduction <add>, %16, %cst_12 [1] : vector<1x32xf32> to vector<1xf32>
    %18 = vector.shape_cast %17 : vector<1xf32> to vector<1x1xf32>
    %cst_13 = arith.constant 3.200000e+01 : f32
    %19 = vector.broadcast %cst_13 : f32 to vector<1x1xf32>
    %20 = arith.divf %18, %19 : vector<1x1xf32>
    %21 = vector.broadcast %20 : vector<1x1xf32> to vector<1x32xf32>
    %22 = arith.subf %16, %21 : vector<1x32xf32>
    %23 = arith.mulf %22, %22 : vector<1x32xf32>
    %cst_14 = arith.constant dense<0.000000e+00> : vector<1xf32>
    %24 = vector.multi_reduction <add>, %23, %cst_14 [1] : vector<1x32xf32> to vector<1xf32>
    %25 = vector.shape_cast %24 : vector<1xf32> to vector<1x1xf32>
    %cst_15 = arith.constant 3.200000e+01 : f32
    %26 = vector.broadcast %cst_15 : f32 to vector<1x1xf32>
    %27 = arith.divf %25, %26 : vector<1x1xf32>
    %cst_16 = arith.constant 9.99999997E-7 : f32
    %28 = vector.broadcast %cst_16 : f32 to vector<1x1xf32>
    %29 = arith.addf %27, %28 : vector<1x1xf32>
    %30 = math.rsqrt %29 : vector<1x1xf32>
    %31 = vector.broadcast %30 : vector<1x1xf32> to vector<1x32xf32>
    %32 = arith.mulf %22, %31 : vector<1x32xf32>
    %c0_17 = arith.constant 0 : index
    %c0_18 = arith.constant 0 : index
    %33 = vector.load %arg6[%c0_17, %c0_18] : memref<1x32xf32, #tpu.memory_space<vmem>>, vector<1x32xf32>
    %34 = arith.mulf %32, %33 : vector<1x32xf32>
    %c0_19 = arith.constant 0 : index
    %c0_20 = arith.constant 0 : index
    %35 = vector.load %arg7[%c0_19, %c0_20] : memref<1x32xf32, #tpu.memory_space<vmem>>, vector<1x32xf32>
    %36 = arith.addf %34, %35 : vector<1x32xf32>
    %37 = arith.truncf %36 : vector<1x32xf32> to vector<1x32xbf16>
    %c0_21 = arith.constant 0 : index
    %c0_22 = arith.constant 0 : index
    %38 = vector.load %arg8[%c0_21, %c0_22] : memref<32x16xbf16, #tpu.memory_space<vmem>>, vector<32x16xbf16>
    %cst_23 = arith.constant dense<0.000000e+00> : vector<1x16xf32>
    %39 = tpu.matmul %37, %38, %cst_23 {dimension_numbers = #tpu.dot_dimension_numbers<[1], [0], [0], [1], [0, 0, 1, 1], [], []>} : vector<1x32xbf16>, vector<32x16xbf16>, vector<1x16xf32> -> vector<1x16xf32>
    %c0_24 = arith.constant 0 : index
    %c0_25 = arith.constant 0 : index
    %40 = vector.load %arg9[%c0_24, %c0_25] : memref<1x16xf32, #tpu.memory_space<vmem>>, vector<1x16xf32>
    %41 = arith.addf %39, %40 : vector<1x16xf32>
    %cst_26 = arith.constant 0.000000e+00 : f32
    %42 = vector.broadcast %cst_26 : f32 to vector<1x16xf32>
    %43 = arith.maximumf %41, %42 : vector<1x16xf32>
    %44 = arith.truncf %43 : vector<1x16xf32> to vector<1x16xbf16>
    %c0_27 = arith.constant 0 : index
    %c0_28 = arith.constant 0 : index
    %45 = vector.load %arg10[%c0_27, %c0_28] : memref<16x8xbf16, #tpu.memory_space<vmem>>, vector<16x8xbf16>
    %cst_29 = arith.constant dense<0.000000e+00> : vector<1x8xf32>
    %46 = tpu.matmul %44, %45, %cst_29 {dimension_numbers = #tpu.dot_dimension_numbers<[1], [0], [0], [1], [0, 0, 1, 1], [], []>} : vector<1x16xbf16>, vector<16x8xbf16>, vector<1x8xf32> -> vector<1x8xf32>
    %c0_30 = arith.constant 0 : index
    %c0_31 = arith.constant 0 : index
    %47 = vector.load %arg11[%c0_30, %c0_31] : memref<1x8xf32, #tpu.memory_space<vmem>>, vector<1x8xf32>
    %48 = arith.addf %46, %47 : vector<1x8xf32>
    %c0_32 = arith.constant 0 : index
    %c0_33 = arith.constant 0 : index
    %c0_34 = arith.constant 0 : index
    %49 = vector.load %arg12[%c0_32, %c0_33, %c0_34] : memref<1x1x8xf32, #tpu.memory_space<vmem>>, vector<1x1x8xf32>
    %50 = vector.shape_cast %49 : vector<1x1x8xf32> to vector<1x8xf32>
    %51 = vector.shape_cast %48 : vector<1x8xf32> to vector<1x1x8xf32>
    tpu.vector_store %arg12[%c0_32, %c0_33, %c0_34], %51 {strides = array<i32>} : memref<1x1x8xf32, #tpu.memory_space<vmem>>, vector<1x1x8xf32>,
    return
  }
  func.func @transform_0(%arg0: i32) -> (i32, i32, i32) {
    %c0_i32 = arith.constant 0 : i32
    %c0_i32_0 = arith.constant 0 : i32
    %c0_i32_1 = arith.constant 0 : i32
    return %arg0, %c0_i32, %c0_i32_0 : i32, i32, i32
  }
  func.func @transform_1(%arg0: i32) -> (i32, i32) {
    %c0_i32 = arith.constant 0 : i32
    %c0_i32_0 = arith.constant 0 : i32
    %c0_i32_1 = arith.constant 0 : i32
    return %c0_i32, %c0_i32_0 : i32, i32
  }
  func.func @transform_2(%arg0: i32) -> (i32, i32) {
    %c0_i32 = arith.constant 0 : i32
    %c0_i32_0 = arith.constant 0 : i32
    %c0_i32_1 = arith.constant 0 : i32
    return %c0_i32, %c0_i32_0 : i32, i32
  }
  func.func @transform_3(%arg0: i32) -> (i32, i32) {
    %c0_i32 = arith.constant 0 : i32
    %c0_i32_0 = arith.constant 0 : i32
    %c0_i32_1 = arith.constant 0 : i32
    return %c0_i32, %c0_i32_0 : i32, i32
  }
  func.func @transform_4(%arg0: i32) -> (i32, i32) {
    %c0_i32 = arith.constant 0 : i32
    %c0_i32_0 = arith.constant 0 : i32
    %c0_i32_1 = arith.constant 0 : i32
    return %c0_i32, %c0_i32_0 : i32, i32
  }
  func.func @transform_5(%arg0: i32) -> (i32, i32) {
    %c0_i32 = arith.constant 0 : i32
    %c0_i32_0 = arith.constant 0 : i32
    %c0_i32_1 = arith.constant 0 : i32
    return %c0_i32, %c0_i32_0 : i32, i32
  }
  func.func @transform_6(%arg0: i32) -> (i32, i32) {
    %c0_i32 = arith.constant 0 : i32
    %c0_i32_0 = arith.constant 0 : i32
    %c0_i32_1 = arith.constant 0 : i32
    return %c0_i32, %c0_i32_0 : i32, i32
  }
  func.func @transform_7(%arg0: i32) -> (i32, i32) {
    %c0_i32 = arith.constant 0 : i32
    %c0_i32_0 = arith.constant 0 : i32
    %c0_i32_1 = arith.constant 0 : i32
    return %c0_i32, %c0_i32_0 : i32, i32
  }
  func.func @transform_8(%arg0: i32) -> (i32, i32) {
    %c0_i32 = arith.constant 0 : i32
    %c0_i32_0 = arith.constant 0 : i32
    %c0_i32_1 = arith.constant 0 : i32
    return %c0_i32, %c0_i32_0 : i32, i32
  }
  func.func @transform_9(%arg0: i32) -> (i32, i32) {
    %c0_i32 = arith.constant 0 : i32
    %c0_i32_0 = arith.constant 0 : i32
    %c0_i32_1 = arith.constant 0 : i32
    return %c0_i32, %c0_i32_0 : i32, i32
  }
  func.func @transform_10(%arg0: i32) -> (i32, i32) {
    %c0_i32 = arith.constant 0 : i32
    %c0_i32_0 = arith.constant 0 : i32
    %c0_i32_1 = arith.constant 0 : i32
    return %c0_i32, %c0_i32_0 : i32, i32
  }
  func.func @transform_11(%arg0: i32) -> (i32, i32, i32) {
    %c0_i32 = arith.constant 0 : i32
    %c0_i32_0 = arith.constant 0 : i32
    %c0_i32_1 = arith.constant 0 : i32
    return %arg0, %c0_i32, %c0_i32_0 : i32, i32, i32
  }
}

</mosaic_0001>

<bundles_post_ra>
// kernel: cls_model_forward.1
= control target key start
LH: loop header
LB: loop body
LE: loop exit
PB: predicated region body
PF: predicated region fallthrough
CT: control target
= control target key end

     0   :  { %s1030_s0 = inlined_call_operand.vmem [shape: bf16[2,16,32], index: 0, kind: input, shape index: {}]   ;;  %s1031_s1 = inlined_call_operand.vmem [shape: bf16[8,16], index: 1, kind: input, shape index: {}]   ;;  %s1032_s2 = inlined_call_operand.vmem [shape: f32[8,1], index: 2, kind: input, shape index: {}]   ;;  %s1033_s3 = inlined_call_operand.vmem [shape: f32[8,1], index: 3, kind: input, shape index: {}]   ;;  %s1034_s4 = inlined_call_operand.<no memory space> [shape: f32[1,1], index: 4, kind: input, shape index: {}]   ;;  %s1035_s5 = inlined_call_operand.vmem [shape: f32[1,32], index: 5, kind: input, shape index: {}]   ;;  %s1036_s6 = inlined_call_operand.vmem [shape: f32[1,32], index: 6, kind: input, shape index: {}]   ;;  %s1037_s7 = inlined_call_operand.vmem [shape: bf16[32,16], index: 7, kind: input, shape index: {}]   ;;  %s1038_s8 = inlined_call_operand.vmem [shape: f32[1,16], index: 8, kind: input, shape index: {}]   ;;  %s1039_s9 = inlined_call_operand.vmem [shape: bf16[16,8], index: 9, kind: input, shape index: {}]   ;;  %s1040_s10 = inlined_call_operand.vmem [shape: f32[1,8], index: 10, kind: input, shape index: {}]   ;;  %s1041_s11 = inlined_call_operand.hbm [shape: f32[2,1,8], index: 11, kind: output, shape index: {}]  }
   0x1   :  { %16 = sst [smem:[#allocation2]] %s1034_s4 }
   0x2   :  { %17 = vsyncpa [#allocation4], 0 }
   0x3   :  { %19 = vsyncpa [#allocation4 + $0x1], 0  ;;  %s891_s19 = smov 0   ;;  %s893_s20 = smov 0  }
   0x4   :  { %s895_s21 = smov 0   ;;  %s897_s22 = smov 0  }
   0x5 LB: > { %s912_s4 = sadd.s32 4294967295, %s822_s22   ;;  %s667_s23 = sadd.s32 4294967294, %s822_s22   ;;  %s822_s22 = sphi %s897_s22, %s1047_s22   ;;  %s818_s21 = sphi %s895_s21, %s1046_s21   ;;  %s814_s20 = sphi %s893_s20, %s1045_s20   ;;  %s810_s19 = sphi %s891_s19, %s1044_s19  }
   0x6   : > { %s916_s24 = sadd.s32 1, %s822_s22   ;;  %s268_s25 = sadd.s32 1, %s818_s21 }
   0x7   : > { %s265_s26 = ssub.s32 %s822_s22, %s916_s24  ;;  %p278_p0 = scmp.ne.s32.totalorder %s818_s21, %s814_s20 }
   0x8   : > { %p266_p1 = scmp.eq.s32.totalorder %s265_s26, 0  ;;  %p279_p2 = scmp.eq.s32.totalorder %s912_s4, 1 }
   0x9   : > { %p284_p3 = scmp.ne.s32.totalorder %s814_s20, %s810_s19  ;;  %p285_p4 = scmp.eq.s32.totalorder %s667_s23, 1 }
   0xa   : > { %s927_s27 = scalar_select %p266_p1, %s818_s21, %s268_s25  }
   0xb   : > { %p929_p5 = por %p279_p2, %p278_p0  ;;  %p933_p6 = por %p285_p4, %p284_p3 }
   0xc   : > { %p670_p7 = scmp.ge.s32.totalorder %s822_s22, 1  ;;  %p341_p8 = scmp.lt.s32.totalorder %s822_s22, 3 }
   0xe   : > { %p342_p9 = pnand %p670_p7, %p341_p8 }
   0xf   : > { %p380_p10 = scmp.lt.s32.totalorder (!%p342_p9), %s912_s4, 1  ;;  %v824_v0 = vmov (!%p342_p9), 0.0   ;;  %vm825_vm0 = vmmov (!%p342_p9), 0   ;;  %v389_v1 = vld [vmem:[%s1032_s2] sm:$0xff] (!%p342_p9)  ;;  %v826_v2 = vmov (!%p342_p9), 0   ;;  %vm401_vm1 = vcmask (!%p342_p9), 130048  }
  0x10   : > { %345 = sbr.rel (%p342_p9) target bundleno = 1025 (0x401), region = 64  ;;  %691 = vmatprep.subr.bf16.mxu0 (!%p342_p9), %v824_v0  ;;  %693 = vmatprep.mubr.msk.bf16.mxu0 (!%p342_p9), %vm825_vm0, %v824_v0  ;;  %v446_v3 = vld [vmem:[%s1033_s3] sm:$0xff] (!%p342_p9)  ;;  %vm453_vm2 = vcmask (!%p342_p9), 261120   ;;  %s461_s30 = sld [smem:[#allocation2]] (!%p342_p9)  ;;  %v756_v31 = vld [vmem:[%s1037_s7 + $0x8] sm:$0xff] (!%p342_p9)   ;;  %vm597_vm3 = vcmask (!%p342_p9), 57344  }
  0x11   : > { %753 = vset.pattern.permute.xlu0 (!%p342_p9), %v826_v2  ;;  %697 = vmatprep.subr.bf16.mxu1 (!%p342_p9), %v824_v0  ;;  %v386_v5 = vld [vmem:[%s1031_s1] sm:$0xf] (!%p342_p9)  ;;  %s680_s16 = sshll.u32 (!%p342_p9), %s912_s4, 4  ;;  %s827_s12 = smov (!%p342_p9), [#allocation3]  }
  0x12   : > { %392 = vperm.xlu0 (!%p342_p9), %753, %v389_v1   ;;  %701 = vmatprep.mubr.msk.bf16.mxu1 (!%p342_p9), %vm825_vm0, %v824_v0  ;;  %v755_v30 = vld [vmem:[%s1037_s7] sm:$0xff] (!%p342_p9)   ;;  %s988_s26 = scalar_lea.hbm (!%p342_p9), %s1041_s11, %s680_s16 }
  0x13   : > { %698 = vmatpush3.bf16.msra.mxu1 (!%p342_p9), %v755_v30  ;;  %v757_v32 = vld [vmem:[%s1039_s9] sm:$0xff] (!%p342_p9)  }
  0x14   : > { %699 = vmatprep.subr.bf16.mxu1 (!%p342_p9), %v824_v0  ;;  %v478_v37 = vld [vmem:[%s1035_s5] sm:$0x1] (!%p342_p9) }
  0x15   : > { %v480_v39 = vld [vmem:[%s1036_s6] sm:$0x1] (!%p342_p9) }
  0x16   : > { %449 = vperm.xlu0 (!%p342_p9), %753, %v446_v3   ;;  %v462_v21 = vstv (!%p342_p9), %s461_s30  ;;  %v487_v43 = vld [vmem:[%s1038_s8] sm:$0x1] (!%p342_p9) }
  0x17   : > { %s381_s13 = scalar_select %p380_p10, %s912_s4, 1  ;;  %700 = vmatpush3.bf16.msra.mxu1 %v756_v31  ;;  %v547_v51 = vld [vmem:[%s1040_s10] sm:$0x1] }
  0x19   : > { %s683_s14 = sshll.u32 %s381_s13, 3  ;;  %s378_s13 = sand.u32 1, %s814_s20  }
  0x1a   : > { %s384_s23 = scalar_lea.vmem %s1030_s0, %s683_s14  ;;  %s379_s17 = scalar_lea.vmem [#allocation3], %s378_s13 }
  0x1b   : > { %v754_v4 = vld [vmem:[%s384_s23] sm:$0xff]   ;;  %s612_s18 = sshll.u32 %s379_s17, 4  ;;  %s600_s4 = scalar_lea.sflag [#allocation4], %s378_s13  ;;  %s990_s18 = int_to_ptr.vmem [resolvable:$true] %s612_s18 }
  0x1c   : > { %692 = vmatpush3.bf16.msra.mxu0 %v754_v4  ;;  %s760_s30 = scalar_lea.vmem %s990_s18, 16  ;;  %s764_s14 = sshll.u32 %s827_s12, 4  ;;  %s765_s14 = int_to_ptr.vmem [resolvable:$false] %s764_s14 }
  0x1d   : > { %705 = vmatprep.subr.bf16.mxu0 %v824_v0  ;;  %p761_p11 = scmp.ne.s32.totalorder %s990_s18, %s760_s30  ;;  %s766_s15 = scalar_lea.vmem %s765_s14, 32 }
  0x1e   : > { %p767_p0 = scmp.lt.s32.totalorder %s990_s18, %s765_s14  ;;  %p768_p1 = scmp.lt.s32.totalorder %s766_s15, %s760_s30 }
  0x1f   : > { %694 = vmatmul.mubr.msk.bf16.vlgmr.msra.gmra.mrb[0].mxu0 %vm401_vm1, %v386_v5  ;;  %p762_p12 = pnand %p761_p11, %p929_p5 }
  0x20   : > { %707 = vmatprep.mubr.msk.bf16.mxu0 %vm825_vm0, %v824_v0  ;;  %706 = vmatpush3.bf16.msra.mxu0 %v757_v32  ;;  %p769_p2 = por %p768_p1, %p767_p0 }
  0x21   : > { %p763_p13 = pneg %p762_p12 }
  0x23   : > { %p770_p3 = pnand %p769_p2, %p763_p13 }
  0x91   : > { %v393_v6 = vpop.permute.xlu0 %392 }
  0x95   : > { %v450_v13 = vpop.permute.xlu0 %449 }
  0xf2   : > { %v439_v7 = vpop.f32.mrb[0].mxu0 }
  0xf3   : > { %v440_v8 = vadd.f32 %v439_v7, %v393_v6  ;;  %v695_v9 = vpop.f32.mrb[1].mxu0 }
  0xf4   : > { %v442_v10 = vpop.f32.mrb[2].mxu0 }
  0xf5   : > { %v445_v11 = vmax.f32 %v440_v8, 0.0  ;;  %v696_v12 = vpop.f32.mrb[3].mxu0 }
  0xf7   : > { %v452_v14 = vmul.f32 %v450_v13, %v445_v11 }
  0xf9   : > { %v454_v15 = vsel %vm453_vm2, %v452_v14, 0.0 }
  0xfa   : > { %v455_v16 = vrot.slane %v454_v15, 4 }
  0xfc   : > { %v456_v17 = vadd.f32 %v455_v16, %v454_v15 }
  0xfe   : > { %v457_v18 = vrot.slane %v456_v17, 2 }
 0x100   : > { %v458_v19 = vadd.f32 %v457_v18, %v456_v17 }
 0x102   : > { %v459_v20 = vrot.slane %v458_v19, 1 }
 0x104   : > { %v460_v22 = vadd.f32 %v459_v20, %v458_v19 }
 0x106   : > { %v463_v23 = vadd.f32 %v462_v21, %v460_v22 }
 0x108   : > { %v464_v24 = vsel %vm453_vm2, %v463_v23, 0.0 }
 0x109   : > { %465 = vadd.xlane.f32.xlu1 %v464_v24 }
 0x196   : > { %v466_v25 = vpop.xlane.xlu1 %465 }
 0x197   : > { %v468_v26 = vmul.f32 0.03125, %v466_v25 }
 0x199   : > { %v469_v27 = vsub.f32 %v463_v23, %v468_v26 }
 0x19b   : > { %v470_v28 = vmul.f32 %v469_v27, %v469_v27 }
 0x19d   : > { %v471_v29 = vsel %vm453_vm2, %v470_v28, 0.0 }
 0x19e   : > { %472 = vadd.xlane.f32.xlu1 %v471_v29 }
 0x22b   : > { %v473_v33 = vpop.xlane.xlu1 %472 }
 0x22c   : > { %v474_v34 = vmul.f32 0.03125, %v473_v33 }
 0x22e   : > { %v475_v35 = vadd.f32 1e-06, %v474_v34 }
 0x230   : > { %758 = vrsqrt.f32 %v475_v35 }
 0x23a   : > { %v759_v36 = vpop.eup %758 }
 0x23b   : > { %v477_v38 = vmul.f32 %v759_v36, %v469_v27 }
 0x23d   : > { %v479_v40 = vmul.f32 %v478_v37, %v477_v38 }
 0x23f   : > { %v481_v41 = vadd.f32 %v480_v39, %v479_v40 }
 0x241   : > { %v482_v42 = vpack.c.bf16 %v481_v41, %v481_v41 }
 0x243   : > { %702 = vmatmul.mubr.msk.bf16.vlgmr.msra.gmra.mrb[0].mxu1 %vm453_vm2, %v482_v42 }
 0x316   : > { %v537_v44 = vpop.f32.mrb[0].mxu1 }
 0x317   : > { %v538_v45 = vadd.f32 %v537_v44, %v487_v43  ;;  %v703_v46 = vpop.f32.mrb[1].mxu1 }
 0x318   : > { %v540_v47 = vpop.f32.mrb[2].mxu1 }
 0x319   : > { %v543_v48 = vmax.f32 %v538_v45, 0.0  ;;  %v704_v49 = vpop.f32.mrb[3].mxu1 }
 0x31b   : > { %v544_v50 = vpack.c.bf16 %v543_v48, %v543_v48 }
 0x31d   : > { %708 = vmatmul.mubr.msk.bf16.vlgmr.msra.gmra.mrb[4].mxu0 %vm401_vm1, %v544_v50 }
 0x3f0   : > { %v591_v52 = vpop.f32.mrb[4].mxu0 }
 0x3f1   : > { %v592_v53 = vadd.f32 %v591_v52, %v547_v51  ;;  %v709_v54 = vpop.f32.mrb[5].mxu0 }
 0x3f2   : > { %v594_v55 = vpop.f32.mrb[6].mxu0 }
 0x3f3   : > { %v710_v56 = vpop.f32.mrb[7].mxu0  ;;  %598 = vst.msk [vmem:[%s379_s17] sm:$0x1] %vm597_vm3, %v592_v53 }
 0x3f4   : > { %773 = shalt.err (!%p770_p3)
}
 0x3f5   : > { %s774_s13 = scalar_lea.hbm %s988_s26, 16  ;;  %s778_s23 = scalar_lea.hbm %s1041_s11, 32 }
 0x3f6   : > { %p775_p4 = scmp.ne.s32.totalorder %s988_s26, %s774_s13  ;;  %p779_p9 = scmp.lt.u32.totalorder %s988_s26, %s1041_s11 }
 0x3f7   : > { %p780_p10 = scmp.lt.u32.totalorder %s778_s23, %s774_s13  ;;  %p782_p12 = scmp.lt.u32.totalorder %s774_s13, %s988_s26 }
 0x3f8   : > { %p776_p7 = pnand %p775_p4, %p929_p5 }
 0x3f9   : > { %p781_p11 = por %p780_p10, %p779_p9 }
 0x3fa   : > { %p777_p8 = pneg %p776_p7 }
 0x3fb   : > { %p783_p13 = por %p782_p12, %p781_p11 }
 0x3fd   : > { %p784_p0 = pnand %p783_p13, %p777_p8 }
 0x3ff   : > { %787 = shalt.err (!%p784_p0)
}
 0x400   : > { %711 = dma.vmem_to_hbm [thread:$0]  (%p929_p5), %s990_s18, 16, %s988_s26, %s600_s4  }
 0x401 PF: > { %p717_p1 = scmp.ge.s32.totalorder %s822_s22, 2  ;;  %s624_s30 = sand.u32 1, %s810_s19  }
 0x402   : > { %s625_s14 = scalar_lea.sflag [#allocation4], %s624_s30 }
 0x403   : > { %p714_p2 = pnand %p717_p1, %p933_p6 }
 0x405   : > { %805 = dma.done.wait (!%p714_p2), %s625_s14, 16  }
 0x406   : > { %807 = vsyncadd (!%p714_p2), %s625_s14, 4294967280  ;;  %p22_p3 = scmp.ge.s32.totalorder %s916_s24, 4   ;;  %s1044_s19 = smov %s814_s20 }
 0x407   : > { %s1045_s20 = smov %s818_s21  ;;  %s1046_s21 = smov %s927_s27 }
 0x408   : > { %s1047_s22 = smov %s916_s24  ;;  %24 = sbr.rel (!%p22_p3) target bundleno = 5 (0x5), region = 99 }
 0x40f   :  { %629 = vsyncpa [#allocation4], 1 }
 0x410   :  { %631 = vsyncpa [#allocation4 + $0x1], 1 }

</bundles_post_ra>
